<compile_context>
chip_gen: v7x
topology: tpu7x:2x2x1
jax: 0.10.0
libtpu: 0.0.40
codegen_flags: <defaults>
</compile_context>

<pallas_src>
import functools

import jax
import jax.numpy as jnp
from jax.experimental import pallas as pl
from jax.experimental.pallas import tpu as pltpu

N_EMBD = 32
HIDDEN = 4 * N_EMBD          # 128
PACK = 4                     # tokens packed per 128-lane row (4 * 32 = 128)
PACKED_C = PACK * N_EMBD     # 128
PACKED_H = PACK * HIDDEN     # 512


def _round_up(a, b):
    return (a + b - 1) // b * b


def _ffn_kernel(x_ref, w1_ref, b1_ref, w2_ref, b2_ref, o_ref):
    # x_ref:  (TM, 128)   4 tokens packed per row (lane-dense)
    # w1_ref: (128, 512)  block-diag(W1 x4);  b1_ref: (1, 512) f32
    # w2_ref: (512, 128)  block-diag(W2 x4);  b2_ref: (1, 128) f32
    x = x_ref[...]
    w1 = w1_ref[...]
    w2 = w2_ref[...]
    h = jnp.dot(x, w1, preferred_element_type=jnp.float32) + b1_ref[...]
    h = jnp.maximum(h, 0.0)                                  # ReLU in f32
    y = jnp.dot(h.astype(w2.dtype), w2, preferred_element_type=jnp.float32)
    y = y + b2_ref[...]
    o_ref[...] = y.astype(o_ref.dtype)


@functools.partial(jax.jit, static_argnames=("tm_rows",))
def feedforward(x, w1, b1, w2, b2, *, tm_rows=1024):
    """x: (B, T, C). w1: (C, 4C), b1: (4C,), w2: (4C, C), b2: (C,). Returns (B, T, C)."""
    B, T, C = x.shape
    assert C == N_EMBD
    out_dtype = x.dtype
    cdt = x.dtype  # MXU-input dtype (f32 or bf16); accumulation is always f32

    M = B * T
    # Pad tokens to a multiple of PACK*8 so packed rows are sublane-aligned.
    M_pad = _round_up(M, PACK * 8)
    x2d = x.reshape(M, C)
    if M_pad != M:
        x2d = jnp.pad(x2d, ((0, M_pad - M), (0, 0)))
    rows = M_pad // PACK
    xp = x2d.reshape(rows, PACKED_C).astype(cdt)   # lane-dense view, same bytes

    tm = min(tm_rows, rows)                        # rows and tm_rows are multiples of 8
    grid = (pl.cdiv(rows, tm),)

    # Block-diagonal weights: packed_x @ W1_big applies W1 to each of the 4 packed
    # tokens independently (and likewise for W2_big). Biases are tiled to match.
    # This is wrapper-side, tiny, and folded into the jitted graph (constant w.r.t.
    # the weights, so it is not recomputed per kernel step).
    eye = jnp.eye(PACK, dtype=jnp.float32)
    w1_big = jnp.kron(eye, w1.astype(jnp.float32)).astype(cdt)   # (128, 512)
    w2_big = jnp.kron(eye, w2.astype(jnp.float32)).astype(cdt)   # (512, 128)
    b1_big = jnp.tile(b1.astype(jnp.float32), PACK).reshape(1, PACKED_H)
    b2_big = jnp.tile(b2.astype(jnp.float32), PACK).reshape(1, PACKED_C)

    flops = 2 * rows * (PACKED_C * PACKED_H + PACKED_H * PACKED_C)
    bytes_accessed = (xp.size + rows * PACKED_C) * jnp.dtype(cdt).itemsize

    outp = pl.pallas_call(
        _ffn_kernel,
        out_shape=jax.ShapeDtypeStruct((rows, PACKED_C), out_dtype),
        grid=grid,
        in_specs=[
            pl.BlockSpec((tm, PACKED_C), lambda i: (i, 0)),        # x tile (pipelined)
            pl.BlockSpec((PACKED_C, PACKED_H), lambda i: (0, 0)),  # w1_big (resident)
            pl.BlockSpec((1, PACKED_H), lambda i: (0, 0)),         # b1 (resident)
            pl.BlockSpec((PACKED_H, PACKED_C), lambda i: (0, 0)),  # w2_big (resident)
            pl.BlockSpec((1, PACKED_C), lambda i: (0, 0)),         # b2 (resident)
        ],
        out_specs=pl.BlockSpec((tm, PACKED_C), lambda i: (i, 0)),
        compiler_params=pltpu.CompilerParams(
            dimension_semantics=("parallel",),        # megacore split on v7x
            vmem_limit_bytes=32 * 1024 * 1024,        # fits v7x's 64 MiB VMEM
        ),
        cost_estimate=pl.CostEstimate(
            flops=flops, transcendentals=0, bytes_accessed=bytes_accessed),
    )(xp, w1_big, b1_big, w2_big, b2_big)

    return outp.reshape(M_pad, C)[:M].reshape(B, T, C)


def _init_params(key):
    # PyTorch nn.Linear default init: U(-1/sqrt(fan_in), 1/sqrt(fan_in)).
    k1, k2, k3, k4 = jax.random.split(key, 4)
    bound1 = 1.0 / (N_EMBD ** 0.5)
    bound2 = 1.0 / (HIDDEN ** 0.5)
    # Stored transposed relative to PyTorch (in, out) so the kernel does x @ W.
    w1 = jax.random.uniform(k1, (N_EMBD, HIDDEN), jnp.float32, -bound1, bound1)
    b1 = jax.random.uniform(k2, (HIDDEN,), jnp.float32, -bound1, bound1)
    w2 = jax.random.uniform(k3, (HIDDEN, N_EMBD), jnp.float32, -bound2, bound2)
    b2 = jax.random.uniform(k4, (N_EMBD,), jnp.float32, -bound2, bound2)
    return w1, b1, w2, b2


def _ref(x, w1, b1, w2, b2):
    xf = x.astype(jnp.float32)
    return jnp.maximum(xf @ w1 + b1, 0.0) @ w2 + b2


if __name__ == "__main__":
    key = jax.random.PRNGKey(0)
    kx, kx2, kp = jax.random.split(key, 3)
    w1, b1, w2, b2 = _init_params(kp)

    # --- Test 1: small shape matching the module spec, f32, single tile -------------
    B, T = 2, 8
    x = jax.random.normal(kx, (B, T, N_EMBD), jnp.float32)
    out = jax.block_until_ready(feedforward(x, w1, b1, w2, b2))
    assert out.shape == (B, T, N_EMBD)
    assert jnp.allclose(out, _ref(x, w1, b1, w2, b2), atol=1e-5, rtol=1e-5)

    # --- Test 2: multi-tile grid (exercises the pipelined M tiling), f32 ------------
    B2, T2 = 2, 2048
    x2 = jax.random.normal(kx2, (B2, T2, N_EMBD), jnp.float32)
    out2 = jax.block_until_ready(feedforward(x2, w1, b1, w2, b2, tm_rows=128))
    assert jnp.allclose(out2, _ref(x2, w1, b1, w2, b2), atol=1e-4, rtol=1e-4)

    # --- Test 3: bf16 activations/weights (halved HBM traffic path), f32 accumulate -
    x2_bf = x2.astype(jnp.bfloat16)
    out3 = jax.block_until_ready(feedforward(x2_bf, w1, b1, w2, b2, tm_rows=128))
    assert jnp.allclose(out3.astype(jnp.float32), _ref(x2, w1, b1, w2, b2),
                        atol=5e-2, rtol=5e-2)

    print("KERNEL_OK")
</pallas_src>

<mosaic_0001>
module attributes {stable_mosaic.version = 11 : i64} {
  func.func @_ffn_kernel(%arg0: i32, %arg1: memref<8x128xf32, #tpu.memory_space<vmem>>, %arg2: memref<128x512xf32, #tpu.memory_space<vmem>>, %arg3: memref<1x512xf32, #tpu.memory_space<vmem>>, %arg4: memref<512x128xf32, #tpu.memory_space<vmem>>, %arg5: memref<1x128xf32, #tpu.memory_space<vmem>>, %arg6: memref<8x128xf32, #tpu.memory_space<vmem>>) attributes {dimension_semantics = [#tpu.dimension_semantics<parallel>], iteration_bounds = array<i64: 1>, scalar_prefetch = 0 : i64, scratch_operands = 0 : i64, tpu.core_type = #tpu.core_type<tc>, window_params = [{transform_indices = @transform_0, window_bounds = array<i64: 8, 128>}, {pipeline_mode = #tpu.pipeline_mode<synchronous>, transform_indices = @transform_1, window_bounds = array<i64: 128, 512>}, {pipeline_mode = #tpu.pipeline_mode<synchronous>, transform_indices = @transform_2, window_bounds = array<i64: 1, 512>}, {pipeline_mode = #tpu.pipeline_mode<synchronous>, transform_indices = @transform_3, window_bounds = array<i64: 512, 128>}, {pipeline_mode = #tpu.pipeline_mode<synchronous>, transform_indices = @transform_4, window_bounds = array<i64: 1, 128>}, {transform_indices = @transform_5, window_bounds = array<i64: 8, 128>}]} {
    %c0 = arith.constant 0 : index
    %c0_0 = arith.constant 0 : index
    %0 = vector.load %arg1[%c0, %c0_0] : memref<8x128xf32, #tpu.memory_space<vmem>>, vector<8x128xf32>
    %c0_1 = arith.constant 0 : index
    %c0_2 = arith.constant 0 : index
    %1 = vector.load %arg2[%c0_1, %c0_2] : memref<128x512xf32, #tpu.memory_space<vmem>>, vector<128x512xf32>
    %c0_3 = arith.constant 0 : index
    %c0_4 = arith.constant 0 : index
    %2 = vector.load %arg4[%c0_3, %c0_4] : memref<512x128xf32, #tpu.memory_space<vmem>>, vector<512x128xf32>
    %cst = arith.constant dense<0.000000e+00> : vector<8x512xf32>
    %3 = tpu.matmul %0, %1, %cst {dimension_numbers = #tpu.dot_dimension_numbers<[1], [0], [0], [1], [0, 0, 1, 1], [], []>} : vector<8x128xf32>, vector<128x512xf32>, vector<8x512xf32> -> vector<8x512xf32>
    %c0_5 = arith.constant 0 : index
    %c0_6 = arith.constant 0 : index
    %4 = vector.load %arg3[%c0_5, %c0_6] : memref<1x512xf32, #tpu.memory_space<vmem>>, vector<1x512xf32>
    %5 = vector.broadcast %4 : vector<1x512xf32> to vector<8x512xf32>
    %6 = arith.addf %3, %5 : vector<8x512xf32>
    %cst_7 = arith.constant 0.000000e+00 : f32
    %7 = vector.broadcast %cst_7 : f32 to vector<8x512xf32>
    %8 = arith.maximumf %6, %7 : vector<8x512xf32>
    %cst_8 = arith.constant dense<0.000000e+00> : vector<8x128xf32>
    %9 = tpu.matmul %8, %2, %cst_8 {dimension_numbers = #tpu.dot_dimension_numbers<[1], [0], [0], [1], [0, 0, 1, 1], [], []>} : vector<8x512xf32>, vector<512x128xf32>, vector<8x128xf32> -> vector<8x128xf32>
    %c0_9 = arith.constant 0 : index
    %c0_10 = arith.constant 0 : index
    %10 = vector.load %arg5[%c0_9, %c0_10] : memref<1x128xf32, #tpu.memory_space<vmem>>, vector<1x128xf32>
    %11 = vector.broadcast %10 : vector<1x128xf32> to vector<8x128xf32>
    %12 = arith.addf %9, %11 : vector<8x128xf32>
    %c0_11 = arith.constant 0 : index
    %c0_12 = arith.constant 0 : index
    %13 = vector.load %arg6[%c0_11, %c0_12] : memref<8x128xf32, #tpu.memory_space<vmem>>, vector<8x128xf32>
    tpu.vector_store %arg6[%c0_11, %c0_12], %12 {strides = array<i32>} : memref<8x128xf32, #tpu.memory_space<vmem>>, vector<8x128xf32>,
    return
  }
  func.func @transform_0(%arg0: i32) -> (i32, i32) {
    %c0_i32 = arith.constant 0 : i32
    %c0_i32_0 = arith.constant 0 : i32
    return %arg0, %c0_i32 : i32, i32
  }
  func.func @transform_1(%arg0: i32) -> (i32, i32) {
    %c0_i32 = arith.constant 0 : i32
    %c0_i32_0 = arith.constant 0 : i32
    %c0_i32_1 = arith.constant 0 : i32
    return %c0_i32, %c0_i32_0 : i32, i32
  }
  func.func @transform_2(%arg0: i32) -> (i32, i32) {
    %c0_i32 = arith.constant 0 : i32
    %c0_i32_0 = arith.constant 0 : i32
    %c0_i32_1 = arith.constant 0 : i32
    return %c0_i32, %c0_i32_0 : i32, i32
  }
  func.func @transform_3(%arg0: i32) -> (i32, i32) {
    %c0_i32 = arith.constant 0 : i32
    %c0_i32_0 = arith.constant 0 : i32
    %c0_i32_1 = arith.constant 0 : i32
    return %c0_i32, %c0_i32_0 : i32, i32
  }
  func.func @transform_4(%arg0: i32) -> (i32, i32) {
    %c0_i32 = arith.constant 0 : i32
    %c0_i32_0 = arith.constant 0 : i32
    %c0_i32_1 = arith.constant 0 : i32
    return %c0_i32, %c0_i32_0 : i32, i32
  }
  func.func @transform_5(%arg0: i32) -> (i32, i32) {
    %c0_i32 = arith.constant 0 : i32
    %c0_i32_0 = arith.constant 0 : i32
    return %arg0, %c0_i32 : i32, i32
  }
}

</mosaic_0001>

<bundles_post_ra>
// kernel: tile.18
= control target key start
LH: loop header
LB: loop body
LE: loop exit
PB: predicated region body
PF: predicated region fallthrough
CT: control target
= control target key end

     0   :  { %s22_s0 = inlined_call_operand.vmem [shape: f32[32], index: 0, kind: input, shape index: {}]   ;;  %s23_s1 = inlined_call_operand.vmem [shape: f32[4,32], index: 1, kind: output, shape index: {}]  }
   0x1   :  { %v4_v0 = vld [vmem:[%s22_s0] ss:$0 sm:$0xff] }
   0x2   :  { %5 = vst [vmem:[%s23_s1] sm:$0xf] %v4_v0 }

// kernel: tile.13
= control target key start
LH: loop header
LB: loop body
LE: loop exit
PB: predicated region body
PF: predicated region fallthrough
CT: control target
= control target key end

     0   :  { %s22_s0 = inlined_call_operand.vmem [shape: f32[128], index: 0, kind: input, shape index: {}]   ;;  %s23_s1 = inlined_call_operand.vmem [shape: f32[4,128], index: 1, kind: output, shape index: {}]  }
   0x1   :  { %v4_v0 = vld [vmem:[%s22_s0] ss:$0 sm:$0xff] }
   0x2   :  { %5 = vst [vmem:[%s23_s1] sm:$0xf] %v4_v0 }

// kernel: tile.19
= control target key start
LH: loop header
LB: loop body
LE: loop exit
PB: predicated region body
PF: predicated region fallthrough
CT: control target
= control target key end

     0   :  { %vm7_vm0 = vcmask 261120   ;;  %s37_s8 = smov 32   ;;  %s38_s9 = smov 64   ;;  %vm13_vm1 = vcmask 1048320   ;;  %vm19_vm2 = vcmask 785920   ;;  %vm25_vm3 = vcmask 523520   ;;  %s55_s0 = inlined_call_operand.vmem [shape: f32[4,32], index: 0, kind: input, shape index: {}]   ;;  %s56_s1 = inlined_call_operand.vmem [shape: f32[1,128], index: 1, kind: output, shape index: {}]  }
   0x1   :  { %v4_v0 = vld [vmem:[%s55_s0] sm:$0xf]  ;;  %s36_s0 = smov 96  }
   0x2   :  { %5 = vst [vmem:[#allocation1] sm:$0xf] %v4_v0 }
   0x9   :  { %v10_v1 = vld [vmem:[#allocation1 + $0x3] sm:$0x1]   ;;  %v22_v2 = vld [vmem:[#allocation1 + $0x1] sm:$0x1]   ;;  %v6_v3 = vld [vmem:[#allocation1] sm:$0x1]  }
   0xa   :  { %11 = vrot.lane.b32.xlu0 %v10_v1, %s36_s0  ;;  %23 = vrot.lane.b32.xlu1 %v22_v2, %s37_s8  ;;  %v16_v4 = vld [vmem:[#allocation1 + $0x2] sm:$0x1]   ;;  %8 = vst.msk [vmem:[#allocation0] sm:$0x1] %vm7_vm0, %v6_v3  }
   0xe   :  { %17 = vrot.lane.b32.xlu0 %v16_v4, %s38_s9 }
  0x7c   :  { %v12_v5 = vpop.permute.xlu0 %11   ;;  %v24_v6 = vpop.permute.xlu1 %23  }
  0x7d   :  { %14 = vst.msk [vmem:[#allocation0] sm:$0x1] %vm13_vm1, %v12_v5  }
  0x80   :  { %v18_v7 = vpop.permute.xlu0 %17  }
  0x81   :  { %20 = vst.msk [vmem:[#allocation0] sm:$0x1] %vm19_vm2, %v18_v7  }
  0x82   :  { %26 = vst.msk [vmem:[#allocation0] sm:$0x1] %vm25_vm3, %v24_v6  }
  0x89   :  { %v30_v8 = vld [vmem:[#allocation0] sm:$0x1] }
  0x8a   :  { %32 = vst [vmem:[%s56_s1] sm:$0x1] %v30_v8 }

// kernel: feedforward.1
= control target key start
LH: loop header
LB: loop body
LE: loop exit
PB: predicated region body
PF: predicated region fallthrough
CT: control target
= control target key end

     0   :  { %v669_v3 = vmov 0.0   ;;  %s1096_s1 = inlined_call_operand.vmem [shape: f32[128,512], index: 1, kind: input, shape index: {}]   ;;  %s1097_s3 = inlined_call_operand.vmem [shape: f32[512,128], index: 3, kind: input, shape index: {}]   ;;  %s1098_s0 = inlined_call_operand.vmem [shape: f32[8,128], index: 0, kind: input, shape index: {}]   ;;  %s1099_s2 = inlined_call_operand.vmem [shape: f32[1,512], index: 2, kind: input, shape index: {}]   ;;  %s1100_s4 = inlined_call_operand.vmem [shape: f32[1,128], index: 4, kind: input, shape index: {}]   ;;  %s1101_s5 = inlined_call_operand.vmem [shape: f32[8,128], index: 5, kind: output, shape index: {}]  }
   0x1   :  { %v22_v0 = vld [vmem:[%s1096_s1 + $0x8] sm:$0xff]  ;;  %v24_v2 = vld [vmem:[%s1096_s1 + $0x18] sm:$0xff]  ;;  %235 = vmatprep.mubr.f32.mxu0 %v669_v3  ;;  %306 = vmatprep.mubr.f32.mxu1 %v669_v3  ;;  %v21_v6 = vld [vmem:[%s1096_s1] sm:$0xff] }
   0x2   :  { %v26_v1 = vld [vmem:[%s1096_s1 + $0x28] sm:$0xff]  ;;  %v28_v5 = vld [vmem:[%s1096_s1 + $0x38] sm:$0xff]  ;;  %v25_v7 = vld [vmem:[%s1096_s1 + $0x20] sm:$0xff] }
   0x3   :  { %v540_v4 = vpack.c.bf16 %v26_v1, %v22_v0  ;;  %v572_v8 = vpack.c.bf16 %v28_v5, %v24_v2  ;;  %v542_v9 = vpack.c.bf16 %v25_v7, %v21_v6  ;;  %v23_v10 = vld [vmem:[%s1096_s1 + $0x10] sm:$0xff]  ;;  %v30_v12 = vld [vmem:[%s1096_s1 + $0x48] sm:$0xff]  ;;  %v32_v15 = vld [vmem:[%s1096_s1 + $0x58] sm:$0xff] }
   0x4   :  { %v27_v11 = vld [vmem:[%s1096_s1 + $0x30] sm:$0xff]  ;;  %v34_v14 = vld [vmem:[%s1096_s1 + $0x68] sm:$0xff]  ;;  %v36_v16 = vld [vmem:[%s1096_s1 + $0x78] sm:$0xff] }
   0x5   :  { %541 = vmatprep.subr.bf16.mxu0 %v540_v4  ;;  %v574_v13 = vpack.c.bf16 %v27_v11, %v23_v10  ;;  %573 = vmatprep.subr.bf16.mxu1 %v572_v8  ;;  %v544_v17 = vpack.c.bf16 %v34_v14, %v30_v12  ;;  %v576_v18 = vpack.c.bf16 %v36_v16, %v32_v15  ;;  %v29_v19 = vld [vmem:[%s1096_s1 + $0x40] sm:$0xff]  ;;  %v31_v21 = vld [vmem:[%s1096_s1 + $0x50] sm:$0xff]  ;;  %v38_v24 = vld [vmem:[%s1096_s1 + $0x88] sm:$0xff] }
   0x6   :  { %543 = vmatpush1.bf16.msra.mxu0 %v542_v9  ;;  %v33_v20 = vld [vmem:[%s1096_s1 + $0x60] sm:$0xff]  ;;  %v35_v23 = vld [vmem:[%s1096_s1 + $0x70] sm:$0xff]  ;;  %v42_v25 = vld [vmem:[%s1096_s1 + $0xa8] sm:$0xff] }
   0x7   :  { %575 = vmatpush1.bf16.msra.mxu1 %v574_v13  ;;  %v546_v22 = vpack.c.bf16 %v33_v20, %v29_v19  ;;  %545 = vmatprep.subr.bf16.mxu0 %v544_v17  ;;  %v578_v26 = vpack.c.bf16 %v35_v23, %v31_v21  ;;  %v548_v27 = vpack.c.bf16 %v42_v25, %v38_v24  ;;  %v40_v28 = vld [vmem:[%s1096_s1 + $0x98] sm:$0xff]  ;;  %v37_v30 = vld [vmem:[%s1096_s1 + $0x80] sm:$0xff]  ;;  %v39_v33 = vld [vmem:[%s1096_s1 + $0x90] sm:$0xff] }
   0x8   :  { %577 = vmatprep.subr.bf16.mxu1 %v576_v18  ;;  %v44_v29 = vld [vmem:[%s1096_s1 + $0xb8] sm:$0xff]  ;;  %v41_v32 = vld [vmem:[%s1096_s1 + $0xa0] sm:$0xff]  ;;  %v43_v34 = vld [vmem:[%s1096_s1 + $0xb0] sm:$0xff] }
   0x9   :  { %v580_v31 = vpack.c.bf16 %v44_v29, %v40_v28  ;;  %v550_v35 = vpack.c.bf16 %v41_v32, %v37_v30  ;;  %v46_v36 = vld [vmem:[%s1096_s1 + $0xc8] sm:$0xff]  ;;  %v48_v38 = vld [vmem:[%s1096_s1 + $0xd8] sm:$0xff]  ;;  %v582_v39 = vpack.c.bf16 %v43_v34, %v39_v33  ;;  %v45_v42 = vld [vmem:[%s1096_s1 + $0xc0] sm:$0xff] }
   0xa   :  { %547 = vmatpush1.bf16.msra.mxu0 %v546_v22  ;;  %v50_v37 = vld [vmem:[%s1096_s1 + $0xe8] sm:$0xff]  ;;  %v52_v41 = vld [vmem:[%s1096_s1 + $0xf8] sm:$0xff]  ;;  %v49_v43 = vld [vmem:[%s1096_s1 + $0xe0] sm:$0xff] }
   0xb   :  { %579 = vmatpush1.bf16.msra.mxu1 %v578_v26  ;;  %549 = vmatprep.subr.bf16.mxu0 %v548_v27  ;;  %v552_v40 = vpack.c.bf16 %v50_v37, %v46_v36  ;;  %v584_v44 = vpack.c.bf16 %v52_v41, %v48_v38  ;;  %v47_v45 = vld [vmem:[%s1096_s1 + $0xd0] sm:$0xff]  ;;  %v54_v47 = vld [vmem:[%s1096_s1 + $0x108] sm:$0xff]  ;;  %v56_v49 = vld [vmem:[%s1096_s1 + $0x118] sm:$0xff]  ;;  %v554_v51 = vpack.c.bf16 %v49_v43, %v45_v42 }
   0xc   :  { %581 = vmatprep.subr.bf16.mxu1 %v580_v31  ;;  %v51_v46 = vld [vmem:[%s1096_s1 + $0xf0] sm:$0xff]  ;;  %v58_v48 = vld [vmem:[%s1096_s1 + $0x128] sm:$0xff]  ;;  %v60_v50 = vld [vmem:[%s1096_s1 + $0x138] sm:$0xff] }
   0xd   :  { %v586_v52 = vpack.c.bf16 %v51_v46, %v47_v45  ;;  %v556_v53 = vpack.c.bf16 %v58_v48, %v54_v47  ;;  %v53_v54 = vld [vmem:[%s1096_s1 + $0x100] sm:$0xff]  ;;  %v55_v56 = vld [vmem:[%s1096_s1 + $0x110] sm:$0xff]  ;;  %v588_v57 = vpack.c.bf16 %v60_v50, %v56_v49  ;;  %v62_v59 = vld [vmem:[%s1096_s1 + $0x148] sm:$0xff] }
   0xe   :  { %551 = vmatpush1.bf16.msra.mxu0 %v550_v35  ;;  %v57_v55 = vld [vmem:[%s1096_s1 + $0x120] sm:$0xff]  ;;  %v59_v58 = vld [vmem:[%s1096_s1 + $0x130] sm:$0xff]  ;;  %v66_v60 = vld [vmem:[%s1096_s1 + $0x168] sm:$0xff] }
   0xf   :  { %583 = vmatpush1.bf16.msra.mxu1 %v582_v39  ;;  %553 = vmatprep.subr.bf16.mxu0 %v552_v40  ;;  %v64_v61 = vld [vmem:[%s1096_s1 + $0x158] sm:$0xff]  ;;  %v558_v63 = vpack.c.bf16 %v57_v55, %v53_v54  ;;  %v590_v0 = vpack.c.bf16 %v59_v58, %v55_v56  ;;  %v560_v1 = vpack.c.bf16 %v66_v60, %v62_v59  ;;  %v61_v2 = vld [vmem:[%s1096_s1 + $0x140] sm:$0xff]  ;;  %v63_v4 = vld [vmem:[%s1096_s1 + $0x150] sm:$0xff] }
  0x10   :  { %585 = vmatprep.subr.bf16.mxu1 %v584_v44  ;;  %v68_v62 = vld [vmem:[%s1096_s1 + $0x178] sm:$0xff]  ;;  %v65_v3 = vld [vmem:[%s1096_s1 + $0x160] sm:$0xff]  ;;  %v67_v6 = vld [vmem:[%s1096_s1 + $0x170] sm:$0xff] }
  0x11   :  { %v592_v5 = vpack.c.bf16 %v68_v62, %v64_v61  ;;  %v70_v7 = vld [vmem:[%s1096_s1 + $0x188] sm:$0xff]  ;;  %v72_v9 = vld [vmem:[%s1096_s1 + $0x198] sm:$0xff]  ;;  %v562_v11 = vpack.c.bf16 %v65_v3, %v61_v2  ;;  %v594_v12 = vpack.c.bf16 %v67_v6, %v63_v4  ;;  %v69_v14 = vld [vmem:[%s1096_s1 + $0x180] sm:$0xff] }
  0x12   :  { %555 = vmatpush1.bf16.msra.mxu0 %v554_v51  ;;  %v74_v8 = vld [vmem:[%s1096_s1 + $0x1a8] sm:$0xff]  ;;  %v76_v10 = vld [vmem:[%s1096_s1 + $0x1b8] sm:$0xff]  ;;  %v73_v15 = vld [vmem:[%s1096_s1 + $0x1a0] sm:$0xff] }
  0x13   :  { %587 = vmatpush1.bf16.msra.mxu1 %v586_v52  ;;  %557 = vmatprep.subr.bf16.mxu0 %v556_v53  ;;  %v564_v13 = vpack.c.bf16 %v74_v8, %v70_v7  ;;  %v71_v16 = vld [vmem:[%s1096_s1 + $0x190] sm:$0xff]  ;;  %v596_v17 = vpack.c.bf16 %v76_v10, %v72_v9  ;;  %v78_v19 = vld [vmem:[%s1096_s1 + $0x1c8] sm:$0xff]  ;;  %v80_v21 = vld [vmem:[%s1096_s1 + $0x1d8] sm:$0xff]  ;;  %v566_v23 = vpack.c.bf16 %v73_v15, %v69_v14 }
  0x14   :  { %589 = vmatprep.subr.bf16.mxu1 %v588_v57  ;;  %v75_v18 = vld [vmem:[%s1096_s1 + $0x1b0] sm:$0xff]  ;;  %v82_v20 = vld [vmem:[%s1096_s1 + $0x1e8] sm:$0xff]  ;;  %v84_v22 = vld [vmem:[%s1096_s1 + $0x1f8] sm:$0xff] }
  0x15   :  { %v598_v24 = vpack.c.bf16 %v75_v18, %v71_v16  ;;  %v568_v25 = vpack.c.bf16 %v82_v20, %v78_v19  ;;  %v77_v26 = vld [vmem:[%s1096_s1 + $0x1c0] sm:$0xff]  ;;  %v79_v28 = vld [vmem:[%s1096_s1 + $0x1d0] sm:$0xff]  ;;  %v600_v29 = vpack.c.bf16 %v84_v22, %v80_v21  ;;  %v102_v32 = vld [vmem:[%s1097_s3 + $0x88] sm:$0xff] }
  0x16   :  { %559 = vmatpush1.bf16.msra.mxu0 %v558_v63  ;;  %v81_v27 = vld [vmem:[%s1096_s1 + $0x1e0] sm:$0xff]  ;;  %v83_v30 = vld [vmem:[%s1096_s1 + $0x1f0] sm:$0xff]  ;;  %v134_v34 = vld [vmem:[%s1097_s3 + $0x188] sm:$0xff] }
  0x17   :  { %591 = vmatpush1.bf16.msra.mxu1 %v590_v0  ;;  %561 = vmatprep.subr.bf16.mxu0 %v560_v1  ;;  %v101_v31 = vld [vmem:[%s1097_s3 + $0x80] sm:$0xff]  ;;  %v570_v35 = vpack.c.bf16 %v81_v27, %v77_v26  ;;  %v602_v36 = vpack.c.bf16 %v83_v30, %v79_v28  ;;  %v86_v39 = vld [vmem:[%s1097_s3 + $0x8] sm:$0xff]  ;;  %v103_v43 = vld [vmem:[%s1097_s3 + $0x90] sm:$0xff] }
  0x18   :  { %593 = vmatprep.subr.bf16.mxu1 %v592_v5  ;;  %v133_v33 = vld [vmem:[%s1097_s3 + $0x180] sm:$0xff]  ;;  %v604_v37 = vpack.c.bf16 %v102_v32, %v101_v31  ;;  %v118_v42 = vld [vmem:[%s1097_s3 + $0x108] sm:$0xff]  ;;  %v104_v44 = vld [vmem:[%s1097_s3 + $0x98] sm:$0xff] }
  0x19   :  { %v85_v38 = vld [vmem:[%s1097_s3] sm:$0xff]  ;;  %v636_v41 = vpack.c.bf16 %v134_v34, %v133_v33  ;;  %v135_v45 = vld [vmem:[%s1097_s3 + $0x190] sm:$0xff]  ;;  %v136_v46 = vld [vmem:[%s1097_s3 + $0x198] sm:$0xff]  ;;  %v608_v50 = vpack.c.bf16 %v104_v44, %v103_v43 }
  0x1a   :  { %563 = vmatpush1.bf16.msra.mxu0 %v562_v11  ;;  %v117_v40 = vld [vmem:[%s1097_s3 + $0x100] sm:$0xff]  ;;  %v606_v48 = vpack.c.bf16 %v86_v39, %v85_v38  ;;  %v87_v51 = vld [vmem:[%s1097_s3 + $0x10] sm:$0xff]  ;;  %v88_v52 = vld [vmem:[%s1097_s3 + $0x18] sm:$0xff]  ;;  %v640_v54 = vpack.c.bf16 %v136_v46, %v135_v45 }
  0x1b   :  { %595 = vmatpush1.bf16.msra.mxu1 %v594_v12  ;;  %565 = vmatprep.subr.bf16.mxu0 %v564_v13  ;;  %v20_v47 = vld [vmem:[%s1098_s0] sm:$0xff]  ;;  %v638_v49 = vpack.c.bf16 %v118_v42, %v117_v40  ;;  %v119_v53 = vld [vmem:[%s1097_s3 + $0x110] sm:$0xff]  ;;  %v120_v55 = vld [vmem:[%s1097_s3 + $0x118] sm:$0xff]  ;;  %v610_v60 = vpack.c.bf16 %v88_v52, %v87_v51 }
  0x1c   :  { %597 = vmatprep.subr.bf16.mxu1 %v596_v17  ;;  %v105_v56 = vld [vmem:[%s1097_s3 + $0xa0] sm:$0xff]  ;;  %v106_v57 = vld [vmem:[%s1097_s3 + $0xa8] sm:$0xff]  ;;  %v642_v61 = vpack.c.bf16 %v120_v55, %v119_v53  ;;  %v107_v4 = vld [vmem:[%s1097_s3 + $0xb0] sm:$0xff] }
  0x1d   :  { %v137_v58 = vld [vmem:[%s1097_s3 + $0x1a0] sm:$0xff]  ;;  %v138_v59 = vld [vmem:[%s1097_s3 + $0x1a8] sm:$0xff]  ;;  %v612_v62 = vpack.c.bf16 %v106_v57, %v105_v56  ;;  %v108_v5 = vld [vmem:[%s1097_s3 + $0xb8] sm:$0xff] }
  0x1e   :  { %567 = vmatpush1.bf16.msra.mxu0 %v566_v23  ;;  %v89_v63 = vld [vmem:[%s1097_s3 + $0x20] sm:$0xff]  ;;  %v90_v0 = vld [vmem:[%s1097_s3 + $0x28] sm:$0xff]  ;;  %v644_v2 = vpack.c.bf16 %v138_v59, %v137_v58  ;;  %v139_v6 = vld [vmem:[%s1097_s3 + $0x1b0] sm:$0xff]  ;;  %v616_v10 = vpack.c.bf16 %v108_v5, %v107_v4 }
  0x1f   :  { %599 = vmatpush1.bf16.msra.mxu1 %v598_v24  ;;  %569 = vmatprep.subr.bf16.mxu0 %v568_v25  ;;  %v121_v1 = vld [vmem:[%s1097_s3 + $0x120] sm:$0xff]  ;;  %v122_v3 = vld [vmem:[%s1097_s3 + $0x128] sm:$0xff]  ;;  %v140_v7 = vld [vmem:[%s1097_s3 + $0x1b8] sm:$0xff]  ;;  %v614_v8 = vpack.c.bf16 %v90_v0, %v89_v63 }
  0x20   :  { %601 = vmatprep.subr.bf16.mxu1 %v600_v29  ;;  %v646_v9 = vpack.c.bf16 %v122_v3, %v121_v1  ;;  %v91_v11 = vld [vmem:[%s1097_s3 + $0x30] sm:$0xff]  ;;  %v92_v12 = vld [vmem:[%s1097_s3 + $0x38] sm:$0xff]  ;;  %v648_v14 = vpack.c.bf16 %v140_v7, %v139_v6  ;;  %v109_v16 = vld [vmem:[%s1097_s3 + $0xc0] sm:$0xff] }
  0x21   :  { %v123_v13 = vld [vmem:[%s1097_s3 + $0x130] sm:$0xff]  ;;  %v124_v15 = vld [vmem:[%s1097_s3 + $0x138] sm:$0xff]  ;;  %v110_v17 = vld [vmem:[%s1097_s3 + $0xc8] sm:$0xff]  ;;  %v618_v20 = vpack.c.bf16 %v92_v12, %v91_v11 }
  0x22   :  { %571 = vmatpush1.bf16.msra.mxu0 %v570_v35  ;;  %v141_v18 = vld [vmem:[%s1097_s3 + $0x1c0] sm:$0xff]  ;;  %v142_v19 = vld [vmem:[%s1097_s3 + $0x1c8] sm:$0xff]  ;;  %v650_v21 = vpack.c.bf16 %v124_v15, %v123_v13  ;;  %v620_v22 = vpack.c.bf16 %v110_v17, %v109_v16  ;;  %v111_v28 = vld [vmem:[%s1097_s3 + $0xd0] sm:$0xff] }
  0x23   :  { %603 = vmatpush1.bf16.msra.mxu1 %v602_v36  ;;  %605 = vmatprep.subr.bf16.mxu0 %v604_v37  ;;  %v93_v23 = vld [vmem:[%s1097_s3 + $0x40] sm:$0xff]  ;;  %v94_v24 = vld [vmem:[%s1097_s3 + $0x48] sm:$0xff]  ;;  %v652_v26 = vpack.c.bf16 %v142_v19, %v141_v18  ;;  %v112_v29 = vld [vmem:[%s1097_s3 + $0xd8] sm:$0xff] }
  0x24   :  { %637 = vmatprep.subr.bf16.mxu1 %v636_v41  ;;  %v125_v25 = vld [vmem:[%s1097_s3 + $0x140] sm:$0xff]  ;;  %v126_v27 = vld [vmem:[%s1097_s3 + $0x148] sm:$0xff]  ;;  %v143_v30 = vld [vmem:[%s1097_s3 + $0x1d0] sm:$0xff]  ;;  %v622_v32 = vpack.c.bf16 %v94_v24, %v93_v23  ;;  %v624_v34 = vpack.c.bf16 %v112_v29, %v111_v28 }
  0x25   :  { %236 = vmatmul.mubr.f32.vlgmr.msra.gmra.mrb[0].mxu0 %v20_v47  ;;  %v144_v31 = vld [vmem:[%s1097_s3 + $0x1d8] sm:$0xff]  ;;  %v654_v33 = vpack.c.bf16 %v126_v27, %v125_v25  ;;  %v95_v35 = vld [vmem:[%s1097_s3 + $0x50] sm:$0xff]  ;;  %v113_v40 = vld [vmem:[%s1097_s3 + $0xe0] sm:$0xff] }
  0x26   :  { %307 = vmatmul.mubr.f32.vlgmr.msra.gmra.mrb[0].mxu1 %v20_v47  ;;  %607 = vmatpush3.bf16.msra.mxu0 %v606_v48  ;;  %v96_v36 = vld [vmem:[%s1097_s3 + $0x58] sm:$0xff]  ;;  %v127_v37 = vld [vmem:[%s1097_s3 + $0x150] sm:$0xff]  ;;  %v656_v38 = vpack.c.bf16 %v144_v31, %v143_v30  ;;  %v114_v41 = vld [vmem:[%s1097_s3 + $0xe8] sm:$0xff] }
  0x27   :  { %639 = vmatpush3.bf16.msra.mxu1 %v638_v49  ;;  %609 = vmatprep.subr.bf16.mxu0 %v608_v50  ;;  %v128_v39 = vld [vmem:[%s1097_s3 + $0x158] sm:$0xff]  ;;  %v145_v42 = vld [vmem:[%s1097_s3 + $0x1e0] sm:$0xff]  ;;  %v146_v43 = vld [vmem:[%s1097_s3 + $0x1e8] sm:$0xff]  ;;  %v626_v44 = vpack.c.bf16 %v96_v36, %v95_v35  ;;  %v628_v46 = vpack.c.bf16 %v114_v41, %v113_v40 }
  0x28   :  { %641 = vmatprep.subr.bf16.mxu1 %v640_v54  ;;  %v658_v45 = vpack.c.bf16 %v128_v39, %v127_v37  ;;  %v660_v47 = vpack.c.bf16 %v146_v43, %v145_v42  ;;  %v97_v48 = vld [vmem:[%s1097_s3 + $0x60] sm:$0xff]  ;;  %v98_v49 = vld [vmem:[%s1097_s3 + $0x68] sm:$0xff]  ;;  %v115_v54 = vld [vmem:[%s1097_s3 + $0xf0] sm:$0xff] }
  0x29   :  { %v129_v50 = vld [vmem:[%s1097_s3 + $0x160] sm:$0xff]  ;;  %v630_v51 = vpack.c.bf16 %v98_v49, %v97_v48  ;;  %v130_v52 = vld [vmem:[%s1097_s3 + $0x168] sm:$0xff]  ;;  %v116_v55 = vld [vmem:[%s1097_s3 + $0xf8] sm:$0xff] }
  0x2a   :  { %611 = vmatpush3.bf16.msra.mxu0 %v610_v60  ;;  %v662_v53 = vpack.c.bf16 %v130_v52, %v129_v50  ;;  %v147_v56 = vld [vmem:[%s1097_s3 + $0x1f0] sm:$0xff]  ;;  %v632_v57 = vpack.c.bf16 %v116_v55, %v115_v54  ;;  %v148_v58 = vld [vmem:[%s1097_s3 + $0x1f8] sm:$0xff]  ;;  %v149_v5 = vld [vmem:[%s1099_s2] sm:$0xf] }
  0x2b   :  { %643 = vmatpush3.bf16.msra.mxu1 %v642_v61  ;;  %613 = vmatprep.subr.bf16.mxu0 %v612_v62  ;;  %v99_v59 = vld [vmem:[%s1097_s3 + $0x70] sm:$0xff]  ;;  %v100_v60 = vld [vmem:[%s1097_s3 + $0x78] sm:$0xff]  ;;  %v664_v61 = vpack.c.bf16 %v148_v58, %v147_v56  ;;  %v469_v27 = vld [vmem:[%s1100_s4] ss:$0 sm:$0xff] }
  0x2c   :  { %645 = vmatprep.subr.bf16.mxu1 %v644_v2  ;;  %v634_v62 = vpack.c.bf16 %v100_v60, %v99_v59  ;;  %v131_v63 = vld [vmem:[%s1097_s3 + $0x170] sm:$0xff]  ;;  %v132_v0 = vld [vmem:[%s1097_s3 + $0x178] sm:$0xff]  ;;  %v151_v2 = vlaneseq }
  0x2d   :  { %v666_v1 = vpack.c.bf16 %v132_v0, %v131_v63 }
  0x2e   :  { %615 = vmatpush3.bf16.msra.mxu0 %v614_v8  ;;  %v152_v3 = vshrl.u32 %v151_v2, 7 }
  0x2f   :  { %647 = vmatpush3.bf16.msra.mxu1 %v646_v9  ;;  %617 = vmatprep.subr.bf16.mxu0 %v616_v10 }
  0x30   :  { %649 = vmatprep.subr.bf16.mxu1 %v648_v14  ;;  %v153_v4 = vsub.s32 0, %v152_v3  ;;  %v161_v6 = vsub.s32 2, %v152_v3  ;;  %v157_v7 = vsub.s32 1, %v152_v3  ;;  %v165_v8 = vsub.s32 3, %v152_v3 }
  0x32   :  { %619 = vmatpush3.bf16.msra.mxu0 %v618_v20  ;;  %v154_v9 = vrot.slane %v149_v5, %v153_v4  ;;  %v162_v10 = vrot.slane %v149_v5, %v161_v6  ;;  %v158_v11 = vrot.slane %v149_v5, %v157_v7  ;;  %v166_v12 = vrot.slane %v149_v5, %v165_v8 }
  0x33   :  { %651 = vmatpush3.bf16.msra.mxu1 %v650_v21  ;;  %621 = vmatprep.subr.bf16.mxu0 %v620_v22 }
  0x34   :  { %653 = vmatprep.subr.bf16.mxu1 %v652_v26 }
  0x36   :  { %623 = vmatpush3.bf16.msra.mxu0 %v622_v32 }
  0x37   :  { %655 = vmatpush3.bf16.msra.mxu1 %v654_v33  ;;  %625 = vmatprep.subr.bf16.mxu0 %v624_v34 }
  0x38   :  { %657 = vmatprep.subr.bf16.mxu1 %v656_v38 }
  0x3a   :  { %627 = vmatpush3.bf16.msra.mxu0 %v626_v44 }
  0x3b   :  { %659 = vmatpush3.bf16.msra.mxu1 %v658_v45  ;;  %629 = vmatprep.subr.bf16.mxu0 %v628_v46 }
  0x3c   :  { %661 = vmatprep.subr.bf16.mxu1 %v660_v47 }
  0x3e   :  { %631 = vmatpush3.bf16.msra.mxu0 %v630_v51 }
  0x3f   :  { %663 = vmatpush3.bf16.msra.mxu1 %v662_v53  ;;  %633 = vmatprep.subr.bf16.mxu0 %v632_v57 }
  0x40   :  { %665 = vmatprep.subr.bf16.mxu1 %v664_v61 }
  0x42   :  { %635 = vmatpush3.bf16.msra.mxu0 %v634_v62 }
  0x43   :  { %667 = vmatpush3.bf16.msra.mxu1 %v666_v1 }
  0xf8   :  { %v237_v13 = vpop.f32.mrb[0].mxu0 }
  0xf9   :  { %v238_v14 = vadd.f32 %v237_v13, %v154_v9  ;;  %v308_v15 = vpop.f32.mrb[0].mxu1  ;;  %v239_v16 = vpop.f32.mrb[1].mxu0 }
  0xfa   :  { %v309_v17 = vadd.f32 %v308_v15, %v162_v10  ;;  %v240_v18 = vadd.f32 %v239_v16, %v158_v11  ;;  %v310_v19 = vpop.f32.mrb[1].mxu1 }
  0xfb   :  { %v311_v20 = vadd.f32 %v310_v19, %v166_v12  ;;  %v313_v23 = vmax.f32 %v238_v14, 0.0 }
  0xfc   :  { %v315_v21 = vmax.f32 %v309_v17, 0.0  ;;  %v314_v22 = vmax.f32 %v240_v18, 0.0 }
  0xfd   :  { %v316_v24 = vmax.f32 %v311_v20, 0.0 }
  0xfe   :  { %388 = vmatprep.mubr.f32.mxu0 %v314_v22 }
  0xff   :  { %458 = vmatprep.mubr.f32.mxu1 %v316_v24  ;;  %389 = vmatmul.mubr.f32.vlgmr.msra.gmra.mrb[2].mxu0 %v313_v23 }
 0x100   :  { %459 = vmatmul.mubr.f32.vlgmr.msra.gmra.mrb[2].mxu1 %v315_v21 }
 0x1d2   :  { %v502_v25 = vpop.f32.mrb[2].mxu0 }
 0x1d3   :  { %v537_v26 = vpop.f32.mrb[2].mxu1  ;;  %v503_v28 = vpop.f32.mrb[3].mxu0 }
 0x1d4   :  { %v504_v29 = vadd.f32 %v503_v28, %v502_v25  ;;  %v538_v30 = vpop.f32.mrb[3].mxu1 }
 0x1d5   :  { %v539_v31 = vadd.f32 %v538_v30, %v537_v26 }
 0x1d6   :  { %v391_v32 = vadd.f32 %v504_v29, %v469_v27 }
 0x1d8   :  { %v461_v33 = vadd.f32 %v539_v31, %v391_v32 }
 0x1da   :  { %464 = vst [vmem:[%s1101_s5] sm:$0xff] %v461_v33 }

</bundles_post_ra>
